<compile_context>
chip_gen: v7x
topology: tpu7x:2x2x1
jax: 0.10.0
libtpu: 0.0.40
codegen_flags: <defaults>
</compile_context>

<pallas_src>
import jax
import jax.numpy as jnp
from jax.experimental import pallas as pl
from jax.experimental.pallas import tpu as pltpu


def _gram_tile_kernel(lhs_ref, rhs_ref, o_ref):
    # lhs_ref: (TM, D), rhs_ref: (TN, D) VMEM tiles; o_ref: (TM, TN) output tile.
    # Contract on the feature (last) axis of both operands -- no x.T needed.
    acc = jax.lax.dot_general(
        lhs_ref[...],
        rhs_ref[...],
        dimension_numbers=(((1,), (1,)), ((), ())),
        preferred_element_type=jnp.float32,
    )
    o_ref[...] = acc.astype(o_ref.dtype)


def _round_tile(t, n):
    """Clamp a tile size to n and keep it a multiple of 128 when n allows."""
    t = min(t, n)
    if n >= 128:
        t = max(128, (t // 128) * 128)
    return t


def inner_product_decoder(x, dropout=0.0, training=False, *,
                          block_m=None, block_n=None,
                          out_dtype=jnp.bfloat16):
    """Pallas implementation of InnerProductDecoder.forward: out = x @ x.T.

    out_dtype defaults to bf16 (halves the write-bound output traffic; Gram
    values lose ~3 decimal digits, fine for link-prediction logits). Pass
    out_dtype=jnp.float32 to match torch.mm numerics exactly.
    """
    # TODO(synk): stochastic dropout via pltpu.prng_random_bits if a nonzero
    # rate in training mode is ever needed; with p == 0.0 dropout is identity.
    assert dropout == 0.0 or not training, "only dropout == 0.0 is implemented"

    n, d = x.shape
    out_dtype = jnp.dtype(out_dtype)

    # Tiny problems: a pallas_call launch plus masked sub-128-lane stores cost
    # more than the few Kflop of work; XLA's fused matmul is strictly faster.
    if n < 128:
        return jnp.dot(x, x.T, preferred_element_type=jnp.float32).astype(out_dtype)

    # --- Tile selection -----------------------------------------------------
    # Rows (sublane axis of the output): modest TM; cap it so the row axis has
    # >= 2 tiles for mid-size N (keeps both v7x TensorCores busy).
    if block_m is None:
        tm = 512
        if n >= 256:
            tm = min(tm, (n // 2 // 128) * 128)
    else:
        tm = block_m
    tm = _round_tile(tm, n)

    # Columns (lane axis of the output): go wide for long contiguous HBM
    # writeback bursts. 2048 f32 * 512 rows double-buffered is ~8 MiB, safe
    # under the explicit 32 MiB VMEM limit on v5e/v6e/v7x.
    tn = block_n if block_n is not None else 2048
    tn = _round_tile(tn, n)

    grid = (pl.cdiv(n, tm), pl.cdiv(n, tn))

    # --- Cost estimate (advisory) --------------------------------------------
    # Output written once; lhs read once; rhs re-read once per row-tile sweep.
    in_item = jnp.dtype(x.dtype).itemsize
    cost = pl.CostEstimate(
        flops=2 * n * n * d,
        transcendentals=0,
        bytes_accessed=(n * n * out_dtype.itemsize
                        + n * d * in_item            # lhs, fetched once
                        + grid[0] * n * d * in_item  # rhs, re-fetched per i
                        ),
    )

    return pl.pallas_call(
        _gram_tile_kernel,
        out_shape=jax.ShapeDtypeStruct((n, n), out_dtype),
        grid=grid,
        in_specs=[
            pl.BlockSpec((tm, d), lambda i, j: (i, 0)),  # lhs row tile (const over j)
            pl.BlockSpec((tn, d), lambda i, j: (j, 0)),  # rhs row tile
        ],
        out_specs=pl.BlockSpec((tm, tn), lambda i, j: (i, j)),
        compiler_params=pltpu.CompilerParams(
            dimension_semantics=("parallel", "parallel"),
            vmem_limit_bytes=32 * 1024 * 1024,
        ),
        cost_estimate=cost,
    )(x, x)


if __name__ == "__main__":
    key = jax.random.PRNGKey(0)
    # 256 nodes, 32-dim embeddings (input_dim = 32).
    N, D = 256, 32
    x = jax.random.normal(key, (N, D), dtype=jnp.float32)

    ref = x @ x.T

    # 1) Default (perf) path: bf16 writeback, auto tiles -> TM=128, TN=256,
    #    grid (2, 1); rhs is a single resident block fetched once.
    out_bf16 = inner_product_decoder(x)
    out_bf16 = jax.block_until_ready(out_bf16)
    assert out_bf16.shape == (N, N)
    assert out_bf16.dtype == jnp.bfloat16
    assert jnp.allclose(out_bf16.astype(jnp.float32), ref,
                        rtol=2e-2, atol=2e-1), "bf16 output mismatch vs reference"

    # 2) Exact-dtype path matching torch.mm(x, x.t()) numerics: f32 output,
    #    explicit 128x128 tiles -> a real 2x2 grid exercising the tiled path.
    out_f32 = inner_product_decoder(x, out_dtype=jnp.float32,
                                    block_m=128, block_n=128)
    out_f32 = jax.block_until_ready(out_f32)
    assert out_f32.shape == (N, N)
    assert out_f32.dtype == jnp.float32
    assert jnp.allclose(out_f32, ref, atol=1e-4, rtol=1e-5), \
        "f32 output mismatch vs reference"

    print("KERNEL_OK")
</pallas_src>

<mosaic_0001>
module attributes {stable_mosaic.version = 11 : i64} {
  func.func @_gram_tile_kernel(%arg0: i32, %arg1: i32, %arg2: memref<128x32xf32, #tpu.memory_space<vmem>>, %arg3: memref<256x32xf32, #tpu.memory_space<vmem>>, %arg4: memref<128x256xbf16, #tpu.memory_space<vmem>>) attributes {dimension_semantics = [#tpu.dimension_semantics<parallel>, #tpu.dimension_semantics<parallel>], iteration_bounds = array<i64: 2, 1>, scalar_prefetch = 0 : i64, scratch_operands = 0 : i64, tpu.core_type = #tpu.core_type<tc>, window_params = [{transform_indices = @transform_0, window_bounds = array<i64: 128, 32>}, {transform_indices = @transform_1, window_bounds = array<i64: 256, 32>}, {transform_indices = @transform_2, window_bounds = array<i64: 128, 256>}]} {
    %c0 = arith.constant 0 : index
    %c0_0 = arith.constant 0 : index
    %0 = vector.load %arg2[%c0, %c0_0] : memref<128x32xf32, #tpu.memory_space<vmem>>, vector<128x32xf32>
    %c0_1 = arith.constant 0 : index
    %c0_2 = arith.constant 0 : index
    %1 = vector.load %arg3[%c0_1, %c0_2] : memref<256x32xf32, #tpu.memory_space<vmem>>, vector<256x32xf32>
    %cst = arith.constant dense<0.000000e+00> : vector<128x256xf32>
    %2 = tpu.matmul %0, %1, %cst {dimension_numbers = #tpu.dot_dimension_numbers<[1], [1], [0], [0], [0, 0, 1, 0], [], []>} : vector<128x32xf32>, vector<256x32xf32>, vector<128x256xf32> -> vector<128x256xf32>
    %3 = arith.truncf %2 : vector<128x256xf32> to vector<128x256xbf16>
    %c0_3 = arith.constant 0 : index
    %c0_4 = arith.constant 0 : index
    %4 = vector.load %arg4[%c0_3, %c0_4] : memref<128x256xbf16, #tpu.memory_space<vmem>>, vector<128x256xbf16>
    tpu.vector_store %arg4[%c0_3, %c0_4], %3 {strides = array<i32>} : memref<128x256xbf16, #tpu.memory_space<vmem>>, vector<128x256xbf16>,
    return
  }
  func.func @transform_0(%arg0: i32, %arg1: i32) -> (i32, i32) {
    %c0_i32 = arith.constant 0 : i32
    %c0_i32_0 = arith.constant 0 : i32
    return %arg0, %c0_i32 : i32, i32
  }
  func.func @transform_1(%arg0: i32, %arg1: i32) -> (i32, i32) {
    %c0_i32 = arith.constant 0 : i32
    %c0_i32_0 = arith.constant 0 : i32
    return %arg1, %c0_i32 : i32, i32
  }
  func.func @transform_2(%arg0: i32, %arg1: i32) -> (i32, i32) {
    %c0_i32 = arith.constant 0 : i32
    return %arg0, %arg1 : i32, i32
  }
}

</mosaic_0001>

<bundles_post_ra>
// kernel: tpu_custom_call.1
= control target key start
LH: loop header
LB: loop body
LE: loop exit
PB: predicated region body
PF: predicated region fallthrough
CT: control target
= control target key end

     0   :  { %7 = vsyncpa [#allocation3], 0  ;;  %s1494_s0 = inlined_call_operand.vmem [shape: f32[256,32], index: 0, kind: input, shape index: {}]   ;;  %s1495_s1 = inlined_call_operand.vmem [shape: f32[256,32], index: 1, kind: input, shape index: {}]   ;;  %s1496_s2 = inlined_call_operand.hbm [shape: bf16[256,256], index: 2, kind: output, shape index: {}]  }
   0x1   :  { %9 = vsyncpa [#allocation3 + $0x1], 0  ;;  %s1133_s9 = smov 0   ;;  %s1135_s10 = smov 0  }
   0x2   :  { %s1137_s11 = smov 0   ;;  %s1139_s12 = smov 0  }
   0x3   :  { %s1141_s13 = smov 0   ;;  %s1143_s14 = smov 0  }
   0x4 LB: > { %s753_s15 = sadd.s32 4294967295, %s1113_s14   ;;  %s754_s16 = sadd.s32 4294967294, %s1113_s14   ;;  %s1113_s14 = sphi %s1143_s14, %s15_s14   ;;  %s1109_s13 = sphi %s1141_s13, %s1505_s13   ;;  %s1105_s12 = sphi %s1139_s12, %s1504_s12   ;;  %s1101_s11 = sphi %s1137_s11, %s1503_s11   ;;  %s1097_s10 = sphi %s1135_s10, %s1502_s10   ;;  %s1093_s9 = sphi %s1133_s9, %s1501_s9  }
   0x5   : > { %s27_s17 = sadd.s32 1, %s1109_s13  ;;  %s88_s18 = sadd.s32 1, %s1101_s11 }
   0x6   : > { %p29_p0 = scmp.ge.s32.totalorder %s27_s17, 2  ;;  %p98_p1 = scmp.ne.s32.totalorder %s1101_s11, %s1097_s10 }
   0x7   : > { %p99_p2 = scmp.eq.s32.totalorder %s753_s15, 1  ;;  %p104_p3 = scmp.ne.s32.totalorder %s1097_s10, %s1093_s9 }
   0x8   : > { %s1507_s17 = smov (%p29_p0, %s27_s17), 0  ;;  %p105_p5 = scmp.eq.s32.totalorder %s754_s16, 1 }
   0x9   : > { %p1173_p4 = por %p99_p2, %p98_p1  ;;  %s83_s20 = ssub.s32 %s1109_s13, %s1507_s17 }
   0xa   : > { %p758_p6 = scmp.ge.s32.totalorder %s1113_s14, 1  ;;  %p86_p7 = scmp.eq.s32.totalorder %s83_s20, 0 }
   0xb   : > { %p1180_p8 = por %p105_p5, %p104_p3  ;;  %p141_p9 = scmp.lt.s32.totalorder %s1113_s14, 3 }
   0xc   : > { %s1186_s22 = scalar_select %p86_p7, %s1101_s11, %s88_s18  }
   0xd   : > { %p142_p10 = pnand %p758_p6, %p141_p9 }
   0xe   : > { %v214_v0 = vld [vmem:[%s1495_s1 + $0x80] sm:$0xff] (!%p142_p10)  ;;  %v215_v1 = vld [vmem:[%s1495_s1 + $0x88] sm:$0xff] (!%p142_p10)  ;;  %vm230_vm0 = vcmask (!%p142_p10), 261120   ;;  %s760_s29 = sshll.u32 (!%p142_p10), %s1105_s12, 4  ;;  %v216_v6 = vld [vmem:[%s1495_s1 + $0x90] sm:$0xff] (!%p142_p10)  ;;  %s849_s24 = sshll.u32 (!%p142_p10), %s1105_s12, 11 }
   0xf   : > { %145 = sbr.rel (%p142_p10) target bundleno = 339 (0x153), region = 28  ;;  %v198_v2 = vld [vmem:[%s1495_s1] sm:$0xff] (!%p142_p10)  ;;  %v914_v3 = vpack.c.bf16 (!%p142_p10), %v215_v1, %v214_v0  ;;  %vm1200_vm1 = vmpackc.low (!%p142_p10), %vm230_vm0, %vm230_vm0  ;;  %v199_v5 = vld [vmem:[%s1495_s1 + $0x8] sm:$0xff] (!%p142_p10)  ;;  %p169_p11 = scmp.lt.s32.totalorder (!%p142_p10), %s760_s29, 31 }
  0x10   : > { %v917_v7 = vpack.c.bf16 (!%p142_p10), %v199_v5, %v198_v2  ;;  %v217_v8 = vld [vmem:[%s1495_s1 + $0x98] sm:$0xff] (!%p142_p10)  ;;  %v200_v10 = vld [vmem:[%s1495_s1 + $0x10] sm:$0xff] (!%p142_p10)  ;;  %v218_v12 = vld [vmem:[%s1495_s1 + $0xa0] sm:$0xff] (!%p142_p10)  ;;  %s1440_s28 = scalar_lea.hbm (!%p142_p10), %s1496_s2, %s849_s24  ;;  %s1115_s3 = smov (!%p142_p10), [#allocation2]  }
  0x11   : > { %916 = vmatprep.subr.msk.bf16.mxu0 (!%p142_p10), %vm1200_vm1, %v914_v3  ;;  %962 = vmatprep.subr.msk.bf16.mxu1 (!%p142_p10), %vm1200_vm1, %v914_v3  ;;  %v920_v9 = vpack.c.bf16 (!%p142_p10), %v217_v8, %v216_v6  ;;  %v201_v11 = vld [vmem:[%s1495_s1 + $0x18] sm:$0xff] (!%p142_p10)  ;;  %v219_v13 = vld [vmem:[%s1495_s1 + $0xa8] sm:$0xff] (!%p142_p10)  ;;  %v202_v18 = vld [vmem:[%s1495_s1 + $0x20] sm:$0xff] (!%p142_p10)  ;;  %s1039_s4 = sshll.u32 (!%p142_p10), %s1115_s3, 4  ;;  %s1040_s4 = int_to_ptr.vmem [resolvable:$false] %s1039_s4 }
  0x12   : > { %919 = vmatpush3.bf16.xpose.msk.msra.mxu0 (!%p142_p10), %vm1200_vm1, %v917_v7  ;;  %970 = vmatpush3.bf16.xpose.msk.msra.mxu1 (!%p142_p10), %vm1200_vm1, %v917_v7  ;;  %v923_v14 = vpack.c.bf16 (!%p142_p10), %v201_v11, %v200_v10  ;;  %v926_v15 = vpack.c.bf16 (!%p142_p10), %v219_v13, %v218_v12  ;;  %v203_v19 = vld [vmem:[%s1495_s1 + $0x28] sm:$0xff] (!%p142_p10)  ;;  %v220_v20 = vld [vmem:[%s1495_s1 + $0xb0] sm:$0xff] (!%p142_p10)  ;;  %v221_v21 = vld [vmem:[%s1495_s1 + $0xb8] sm:$0xff] (!%p142_p10)  ;;  %s1041_s5 = scalar_lea.vmem (!%p142_p10), %s1040_s4, 4096 }
  0x13   : > { %922 = vmatprep.subr.msk.bf16.mxu0 (!%p142_p10), %vm1200_vm1, %v920_v9  ;;  %963 = vmatprep.subr.msk.bf16.mxu1 (!%p142_p10), %vm1200_vm1, %v920_v9  ;;  %v929_v22 = vpack.c.bf16 (!%p142_p10), %v203_v19, %v202_v18  ;;  %v932_v23 = vpack.c.bf16 (!%p142_p10), %v221_v21, %v220_v20  ;;  %v204_v24 = vld [vmem:[%s1495_s1 + $0x30] sm:$0xff] (!%p142_p10)  ;;  %v205_v25 = vld [vmem:[%s1495_s1 + $0x38] sm:$0xff] (!%p142_p10)  ;;  %v222_v26 = vld [vmem:[%s1495_s1 + $0xc0] sm:$0xff] (!%p142_p10) }
  0x14   : > { %v223_v27 = vld [vmem:[%s1495_s1 + $0xc8] sm:$0xff] (!%p142_p10)  ;;  %v935_v28 = vpack.c.bf16 (!%p142_p10), %v205_v25, %v204_v24  ;;  %v206_v30 = vld [vmem:[%s1495_s1 + $0x40] sm:$0xff] (!%p142_p10)  ;;  %v224_v32 = vld [vmem:[%s1495_s1 + $0xd0] sm:$0xff] (!%p142_p10) }
  0x15   : > { %v938_v29 = vpack.c.bf16 (!%p142_p10), %v223_v27, %v222_v26  ;;  %v207_v31 = vld [vmem:[%s1495_s1 + $0x48] sm:$0xff] (!%p142_p10)  ;;  %v225_v33 = vld [vmem:[%s1495_s1 + $0xd8] sm:$0xff] (!%p142_p10)  ;;  %v208_v36 = vld [vmem:[%s1495_s1 + $0x50] sm:$0xff] (!%p142_p10) }
  0x16   : > { %s1509_s29 = smov (!%p169_p11, %s760_s29), 31  ;;  %v941_v34 = vpack.c.bf16 %v207_v31, %v206_v30  ;;  %v944_v35 = vpack.c.bf16 %v225_v33, %v224_v32  ;;  %v209_v37 = vld [vmem:[%s1495_s1 + $0x58] sm:$0xff]  ;;  %v226_v38 = vld [vmem:[%s1495_s1 + $0xe0] sm:$0xff]  ;;  %v227_v39 = vld [vmem:[%s1495_s1 + $0xe8] sm:$0xff] }
  0x17   : > { %s761_s20 = sshll.u32 %s1509_s29, 3  ;;  %v947_v40 = vpack.c.bf16 %v209_v37, %v208_v36  ;;  %v950_v41 = vpack.c.bf16 %v227_v39, %v226_v38  ;;  %v210_v42 = vld [vmem:[%s1495_s1 + $0x60] sm:$0xff]  ;;  %v211_v43 = vld [vmem:[%s1495_s1 + $0x68] sm:$0xff]  ;;  %v228_v44 = vld [vmem:[%s1495_s1 + $0xf0] sm:$0xff] }
  0x18   : > { %s1240_s30 = scalar_lea.vmem %s1494_s0, %s761_s20  ;;  %v229_v45 = vld [vmem:[%s1495_s1 + $0xf8] sm:$0xff]  ;;  %v953_v46 = vpack.c.bf16 %v211_v43, %v210_v42  ;;  %v212_v48 = vld [vmem:[%s1495_s1 + $0x70] sm:$0xff]  ;;  %s165_s20 = sand.u32 1, %s1097_s10  }
  0x19   : > { %v1243_v16 = vld [vmem:[%s1240_s30] sm:$0xff]  ;;  %v956_v47 = vpack.c.bf16 %v229_v45, %v228_v44  ;;  %v213_v49 = vld [vmem:[%s1495_s1 + $0x78] sm:$0xff]  ;;  %v183_v51 = vld [vmem:[%s1240_s30 + $0x8] sm:$0xff]  ;;  %s759_s23 = sshll.u32 %s165_s20, 7  ;;  %s1448_s12 = scalar_lea.sflag [#allocation3], %s165_s20 }
  0x1a   : > { %v1246_v17 = vld [vmem:[%s1240_s30 + $0x40] sm:$0xff]  ;;  %925 = vmatpush3.bf16.xpose.msk.msra.mxu0 %vm1200_vm1, %v923_v14  ;;  %971 = vmatpush3.bf16.xpose.msk.msra.mxu1 %vm1200_vm1, %v923_v14  ;;  %v959_v50 = vpack.c.bf16 %v213_v49, %v212_v48  ;;  %v191_v52 = vld [vmem:[%s1240_s30 + $0x48] sm:$0xff]  ;;  %v184_v53 = vld [vmem:[%s1240_s30 + $0x10] sm:$0xff] }
  0x1b   : > { %928 = vmatprep.subr.msk.bf16.mxu0 %vm1200_vm1, %v926_v15  ;;  %964 = vmatprep.subr.msk.bf16.mxu1 %vm1200_vm1, %v926_v15  ;;  %v192_v54 = vld [vmem:[%s1240_s30 + $0x50] sm:$0xff]  ;;  %v185_v55 = vld [vmem:[%s1240_s30 + $0x18] sm:$0xff]  ;;  %v186_v57 = vld [vmem:[%s1240_s30 + $0x20] sm:$0xff] }
  0x1c   : > { %882 = vmatprep.mubr.msk.f32.mxu0 %vm230_vm0, %v1243_v16  ;;  %898 = vmatprep.mubr.msk.f32.mxu1 %vm230_vm0, %v1246_v17  ;;  %v193_v56 = vld [vmem:[%s1240_s30 + $0x58] sm:$0xff]  ;;  %v194_v58 = vld [vmem:[%s1240_s30 + $0x60] sm:$0xff]  ;;  %v187_v59 = vld [vmem:[%s1240_s30 + $0x28] sm:$0xff] }
  0x1d   : > { %v195_v60 = vld [vmem:[%s1240_s30 + $0x68] sm:$0xff]  ;;  %v188_v61 = vld [vmem:[%s1240_s30 + $0x30] sm:$0xff]  ;;  %v189_v63 = vld [vmem:[%s1240_s30 + $0x38] sm:$0xff] }
  0x1e   : > { %v196_v62 = vld [vmem:[%s1240_s30 + $0x70] sm:$0xff]  ;;  %v197_v0 = vld [vmem:[%s1240_s30 + $0x78] sm:$0xff]  ;;  %s1419_s30 = scalar_lea.vmem [#allocation2], %s759_s23 }
  0x1f   : > { %s665_s25 = sshll.u32 %s1419_s30, 4  ;;  %s1442_s25 = int_to_ptr.vmem [resolvable:$true] %s665_s25 }
  0x20   : > { %s1035_s29 = scalar_lea.vmem %s1442_s25, 2048  ;;  %p1042_p1 = scmp.lt.s32.totalorder %s1442_s25, %s1040_s4 }
  0x21   : > { %p1036_p12 = scmp.ne.s32.totalorder %s1442_s25, %s1035_s29  ;;  %p1043_p2 = scmp.lt.s32.totalorder %s1041_s5, %s1035_s29 }
  0x22   : > { %931 = vmatpush3.bf16.xpose.msk.msra.mxu0 %vm1200_vm1, %v929_v22  ;;  %972 = vmatpush3.bf16.xpose.msk.msra.mxu1 %vm1200_vm1, %v929_v22 }
  0x23   : > { %934 = vmatprep.subr.msk.bf16.mxu0 %vm1200_vm1, %v932_v23  ;;  %965 = vmatprep.subr.msk.bf16.mxu1 %vm1200_vm1, %v932_v23  ;;  %p1037_p13 = pnand %p1036_p12, %p1173_p4  ;;  %p1044_p3 = por %p1043_p2, %p1042_p1 }
  0x25   : > { %p1038_p0 = pneg %p1037_p13 }
  0x27   : > { %p1045_p5 = pnand %p1044_p3, %p1038_p0 }
  0x2a   : > { %937 = vmatpush3.bf16.xpose.msk.msra.mxu0 %vm1200_vm1, %v935_v28  ;;  %973 = vmatpush3.bf16.xpose.msk.msra.mxu1 %vm1200_vm1, %v935_v28 }
  0x2b   : > { %940 = vmatprep.subr.msk.bf16.mxu0 %vm1200_vm1, %v938_v29  ;;  %966 = vmatprep.subr.msk.bf16.mxu1 %vm1200_vm1, %v938_v29 }
  0x32   : > { %943 = vmatpush3.bf16.xpose.msk.msra.mxu0 %vm1200_vm1, %v941_v34  ;;  %974 = vmatpush3.bf16.xpose.msk.msra.mxu1 %vm1200_vm1, %v941_v34 }
  0x33   : > { %946 = vmatprep.subr.msk.bf16.mxu0 %vm1200_vm1, %v944_v35  ;;  %967 = vmatprep.subr.msk.bf16.mxu1 %vm1200_vm1, %v944_v35 }
  0x3a   : > { %949 = vmatpush3.bf16.xpose.msk.msra.mxu0 %vm1200_vm1, %v947_v40  ;;  %975 = vmatpush3.bf16.xpose.msk.msra.mxu1 %vm1200_vm1, %v947_v40 }
  0x3b   : > { %952 = vmatprep.subr.msk.bf16.mxu0 %vm1200_vm1, %v950_v41  ;;  %968 = vmatprep.subr.msk.bf16.mxu1 %vm1200_vm1, %v950_v41 }
  0x42   : > { %955 = vmatpush3.bf16.xpose.msk.msra.mxu0 %vm1200_vm1, %v953_v46  ;;  %976 = vmatpush3.bf16.xpose.msk.msra.mxu1 %vm1200_vm1, %v953_v46 }
  0x43   : > { %958 = vmatprep.subr.msk.bf16.mxu0 %vm1200_vm1, %v956_v47  ;;  %969 = vmatprep.subr.msk.bf16.mxu1 %vm1200_vm1, %v956_v47 }
  0x4a   : > { %961 = vmatpush3.bf16.xpose.msk.msra.mxu0 %vm1200_vm1, %v959_v50  ;;  %977 = vmatpush3.bf16.xpose.msk.msra.mxu1 %vm1200_vm1, %v959_v50 }
  0x51   : > { %883 = vmatmul.mubr.msk.f32.vlgmr.msra.gmra.mrb[0].mxu0 %vm230_vm0, %v1243_v16  ;;  %899 = vmatmul.mubr.msk.f32.vlgmr.msra.gmra.mrb[0].mxu1 %vm230_vm0, %v1246_v17 }
  0x52   : > { %884 = vmatprep.mubr.msk.f32.mxu0 %vm230_vm0, %v183_v51  ;;  %900 = vmatprep.mubr.msk.f32.mxu1 %vm230_vm0, %v191_v52 }
  0x55   : > { %885 = vmatmul.mubr.msk.f32.gmra.mrb[2].mxu0 %vm230_vm0, %v183_v51  ;;  %901 = vmatmul.mubr.msk.f32.gmra.mrb[2].mxu1 %vm230_vm0, %v191_v52 }
  0x56   : > { %886 = vmatprep.mubr.msk.f32.mxu0 %vm230_vm0, %v184_v53  ;;  %902 = vmatprep.mubr.msk.f32.mxu1 %vm230_vm0, %v192_v54 }
  0x59   : > { %887 = vmatmul.mubr.msk.f32.gmra.mrb[4].mxu0 %vm230_vm0, %v184_v53  ;;  %903 = vmatmul.mubr.msk.f32.gmra.mrb[4].mxu1 %vm230_vm0, %v192_v54 }
  0x5a   : > { %888 = vmatprep.mubr.msk.f32.mxu0 %vm230_vm0, %v185_v55  ;;  %904 = vmatprep.mubr.msk.f32.mxu1 %vm230_vm0, %v193_v56 }
  0x5d   : > { %889 = vmatmul.mubr.msk.f32.gmra.mrb[6].mxu0 %vm230_vm0, %v185_v55  ;;  %905 = vmatmul.mubr.msk.f32.gmra.mrb[6].mxu1 %vm230_vm0, %v193_v56 }
  0x5e   : > { %890 = vmatprep.mubr.msk.f32.mxu0 %vm230_vm0, %v186_v57  ;;  %906 = vmatprep.mubr.msk.f32.mxu1 %vm230_vm0, %v194_v58 }
  0x61   : > { %891 = vmatmul.mubr.msk.f32.gmra.mrb[8].mxu0 %vm230_vm0, %v186_v57  ;;  %907 = vmatmul.mubr.msk.f32.gmra.mrb[8].mxu1 %vm230_vm0, %v194_v58 }
  0x62   : > { %892 = vmatprep.mubr.msk.f32.mxu0 %vm230_vm0, %v187_v59  ;;  %908 = vmatprep.mubr.msk.f32.mxu1 %vm230_vm0, %v195_v60 }
  0x65   : > { %893 = vmatmul.mubr.msk.f32.gmra.mrb[10].mxu0 %vm230_vm0, %v187_v59  ;;  %909 = vmatmul.mubr.msk.f32.gmra.mrb[10].mxu1 %vm230_vm0, %v195_v60 }
  0x66   : > { %894 = vmatprep.mubr.msk.f32.mxu0 %vm230_vm0, %v188_v61  ;;  %910 = vmatprep.mubr.msk.f32.mxu1 %vm230_vm0, %v196_v62 }
  0x69   : > { %895 = vmatmul.mubr.msk.f32.gmra.mrb[12].mxu0 %vm230_vm0, %v188_v61  ;;  %911 = vmatmul.mubr.msk.f32.gmra.mrb[12].mxu1 %vm230_vm0, %v196_v62 }
  0x6a   : > { %896 = vmatprep.mubr.msk.f32.mxu0 %vm230_vm0, %v189_v63  ;;  %912 = vmatprep.mubr.msk.f32.mxu1 %vm230_vm0, %v197_v0 }
  0x6d   : > { %897 = vmatmul.mubr.msk.f32.gmra.mrb[14].mxu0 %vm230_vm0, %v189_v63  ;;  %913 = vmatmul.mubr.msk.f32.gmra.mrb[14].mxu1 %vm230_vm0, %v197_v0 }
 0x124   : > { %v441_v1 = vpop.f32.mrb[0].mxu0  ;;  %v489_v2 = vpop.f32.mrb[0].mxu1 }
 0x125   : > { %v443_v3 = vpop.f32.mrb[1].mxu0  ;;  %v491_v4 = vpop.f32.mrb[1].mxu1 }
 0x126   : > { %v832_v5 = vpack.c.bf16 %v443_v3, %v441_v1  ;;  %v840_v6 = vpack.c.bf16 %v491_v4, %v489_v2 }
 0x128   : > { %632 = vst [vmem:[%s1419_s30] sm:$0xff] %v832_v5  ;;  %640 = vst [vmem:[%s1419_s30 + $0x40] sm:$0xff] %v840_v6  ;;  %v447_v7 = vpop.f32.mrb[2].mxu0  ;;  %v495_v8 = vpop.f32.mrb[2].mxu1 }
 0x129   : > { %v449_v9 = vpop.f32.mrb[3].mxu0  ;;  %v497_v10 = vpop.f32.mrb[3].mxu1 }
 0x12a   : > { %v833_v11 = vpack.c.bf16 %v449_v9, %v447_v7  ;;  %v841_v12 = vpack.c.bf16 %v497_v10, %v495_v8 }
 0x12c   : > { %633 = vst [vmem:[%s1419_s30 + $0x8] sm:$0xff] %v833_v11  ;;  %641 = vst [vmem:[%s1419_s30 + $0x48] sm:$0xff] %v841_v12  ;;  %v453_v13 = vpop.f32.mrb[4].mxu0  ;;  %v501_v14 = vpop.f32.mrb[4].mxu1 }
 0x12d   : > { %v455_v15 = vpop.f32.mrb[5].mxu0  ;;  %v503_v16 = vpop.f32.mrb[5].mxu1 }
 0x12e   : > { %v834_v17 = vpack.c.bf16 %v455_v15, %v453_v13  ;;  %v842_v18 = vpack.c.bf16 %v503_v16, %v501_v14 }
 0x130   : > { %634 = vst [vmem:[%s1419_s30 + $0x10] sm:$0xff] %v834_v17  ;;  %642 = vst [vmem:[%s1419_s30 + $0x50] sm:$0xff] %v842_v18  ;;  %v459_v19 = vpop.f32.mrb[6].mxu0  ;;  %v507_v20 = vpop.f32.mrb[6].mxu1 }
 0x131   : > { %v461_v21 = vpop.f32.mrb[7].mxu0  ;;  %v509_v22 = vpop.f32.mrb[7].mxu1 }
 0x132   : > { %v835_v23 = vpack.c.bf16 %v461_v21, %v459_v19  ;;  %v843_v24 = vpack.c.bf16 %v509_v22, %v507_v20 }
 0x134   : > { %635 = vst [vmem:[%s1419_s30 + $0x18] sm:$0xff] %v835_v23  ;;  %643 = vst [vmem:[%s1419_s30 + $0x58] sm:$0xff] %v843_v24  ;;  %v465_v25 = vpop.f32.mrb[8].mxu0  ;;  %v513_v26 = vpop.f32.mrb[8].mxu1 }
 0x135   : > { %v467_v27 = vpop.f32.mrb[9].mxu0  ;;  %v515_v28 = vpop.f32.mrb[9].mxu1 }
 0x136   : > { %v836_v29 = vpack.c.bf16 %v467_v27, %v465_v25  ;;  %v844_v30 = vpack.c.bf16 %v515_v28, %v513_v26 }
 0x138   : > { %636 = vst [vmem:[%s1419_s30 + $0x20] sm:$0xff] %v836_v29  ;;  %644 = vst [vmem:[%s1419_s30 + $0x60] sm:$0xff] %v844_v30  ;;  %v471_v31 = vpop.f32.mrb[10].mxu0  ;;  %v519_v32 = vpop.f32.mrb[10].mxu1 }
 0x139   : > { %v473_v33 = vpop.f32.mrb[11].mxu0  ;;  %v521_v34 = vpop.f32.mrb[11].mxu1 }
 0x13a   : > { %v837_v35 = vpack.c.bf16 %v473_v33, %v471_v31  ;;  %v845_v36 = vpack.c.bf16 %v521_v34, %v519_v32 }
 0x13c   : > { %637 = vst [vmem:[%s1419_s30 + $0x28] sm:$0xff] %v837_v35  ;;  %645 = vst [vmem:[%s1419_s30 + $0x68] sm:$0xff] %v845_v36  ;;  %v477_v37 = vpop.f32.mrb[12].mxu0  ;;  %v525_v38 = vpop.f32.mrb[12].mxu1 }
 0x13d   : > { %v479_v39 = vpop.f32.mrb[13].mxu0  ;;  %v527_v40 = vpop.f32.mrb[13].mxu1 }
 0x13e   : > { %v838_v41 = vpack.c.bf16 %v479_v39, %v477_v37  ;;  %v846_v42 = vpack.c.bf16 %v527_v40, %v525_v38 }
 0x140   : > { %638 = vst [vmem:[%s1419_s30 + $0x30] sm:$0xff] %v838_v41  ;;  %646 = vst [vmem:[%s1419_s30 + $0x70] sm:$0xff] %v846_v42  ;;  %v483_v43 = vpop.f32.mrb[14].mxu0  ;;  %v531_v44 = vpop.f32.mrb[14].mxu1 }
 0x141   : > { %v485_v45 = vpop.f32.mrb[15].mxu0  ;;  %v533_v46 = vpop.f32.mrb[15].mxu1 }
 0x142   : > { %v839_v47 = vpack.c.bf16 %v485_v45, %v483_v43  ;;  %v847_v48 = vpack.c.bf16 %v533_v46, %v531_v44 }
 0x144   : > { %639 = vst [vmem:[%s1419_s30 + $0x38] sm:$0xff] %v839_v47  ;;  %647 = vst [vmem:[%s1419_s30 + $0x78] sm:$0xff] %v847_v48 }
 0x145   : > { %1048 = shalt.err (!%p1045_p5)
}
 0x146   : > { %s1049_s6 = scalar_lea.hbm %s1440_s28, 2048  ;;  %s1053_s15 = scalar_lea.hbm %s1496_s2, 4096 }
 0x147   : > { %p1050_p6 = scmp.ne.s32.totalorder %s1440_s28, %s1049_s6  ;;  %p1054_p10 = scmp.lt.u32.totalorder %s1440_s28, %s1496_s2 }
 0x148   : > { %p1055_p11 = scmp.lt.u32.totalorder %s1053_s15, %s1049_s6  ;;  %p1057_p13 = scmp.lt.u32.totalorder %s1049_s6, %s1440_s28 }
 0x149   : > { %p1051_p7 = pnand %p1050_p6, %p1173_p4 }
 0x14a   : > { %p1056_p12 = por %p1055_p11, %p1054_p10 }
 0x14b   : > { %p1052_p9 = pneg %p1051_p7 }
 0x14c   : > { %p1058_p0 = por %p1057_p13, %p1056_p12 }
 0x14e   : > { %p1059_p1 = pnand %p1058_p0, %p1052_p9 }
 0x150   : > { %1062 = shalt.err (!%p1059_p1)
}
 0x151   : > { %s1116_s20 = smov 128   ;;  %s1117_s23 = smov 8  }
 0x152   : > { %978 = dma.vmem_to_hbm [thread:$0]  (%p1173_p4), %s1442_s25, 2048, %s1440_s28, %s1448_s12, %s1116_s20, %s1116_s20, %s1117_s23  }
 0x153 PF: > { %p984_p2 = scmp.ge.s32.totalorder %s1113_s14, 2  ;;  %s680_s30 = sand.u32 1, %s1093_s9  }
 0x154   : > { %s681_s24 = scalar_lea.sflag [#allocation3], %s680_s30 }
 0x155   : > { %p981_p3 = pnand %p984_p2, %p1180_p8 }
 0x157   : > { %1088 = dma.done.wait (!%p981_p3), %s681_s24, 2048  }
 0x158   : > { %1090 = vsyncadd (!%p981_p3), %s681_s24, 4294965248  ;;  %s15_s14 = sadd.s32 1, %s1113_s14   ;;  %s1501_s9 = smov %s1097_s10 }
 0x159   : > { %p12_p5 = scmp.ge.s32.totalorder %s15_s14, 4   ;;  %s1502_s10 = smov %s1101_s11 }
 0x15a   : > { %s1503_s11 = smov %s1186_s22  ;;  %s1504_s12 = smov %s1109_s13 }
 0x15b   : > { %s1505_s13 = smov %s1507_s17  ;;  %14 = sbr.rel (!%p12_p5) target bundleno = 4 (0x4), region = 66 }
 0x162   :  { %686 = vsyncpa [#allocation3], 1 }
 0x163   :  { %688 = vsyncpa [#allocation3 + $0x1], 1 }

</bundles_post_ra>
